<compile_context>
chip_gen: v7x
topology: tpu7x:2x2x1
jax: 0.10.0
libtpu: 0.0.40
codegen_flags: <defaults>
</compile_context>

<pallas_src>
import jax
import jax.numpy as jnp
from jax.experimental import pallas as pl
from jax.experimental.pallas import tpu as pltpu

_LANE = 128          # lane width (batch tile granularity)
_FEAT_PAD = 8        # in-features (4) padded to the f32 sublane count


def _round_up(n, m):
    return (n + m - 1) // m * m


def _discriminator_kernel(xz_ref, w1t_ref, b1_ref, w2t_ref, b2_ref,
                          w3t_ref, b3_ref, o_ref):
    """Fused 3-layer MLP over one transposed batch tile.

    xz_ref  : [8, TILE_B]   rows 0..3 = (x0, x1, z0, z1), rows 4..7 = 0
    w1t_ref : [64, 8]       W1^T, columns 4..7 zero
    b1_ref  : [64, 1]
    w2t_ref : [64, 64]      W2^T
    b2_ref  : [64, 1]
    w3t_ref : [8, 64]       row 0 = W3^T, rows 1..7 zero
    b3_ref  : [1, 1]
    o_ref   : [1, TILE_B]   lane-dense output tile
    """
    # Layer 1: Linear(4, 64) + ReLU  (MXU; K padded to 8 with zeros)
    h1 = jnp.dot(w1t_ref[...], xz_ref[...],
                 preferred_element_type=jnp.float32) + b1_ref[...]
    h1 = jnp.maximum(h1, 0.0)                                  # [64, TILE_B]

    # Layer 2: Linear(64, 64) + ReLU  (MXU)
    h2 = jnp.dot(w2t_ref[...], h1,
                 preferred_element_type=jnp.float32) + b2_ref[...]
    h2 = jnp.maximum(h2, 0.0)                                  # [64, TILE_B]

    # Layer 3: Linear(64, 1) + Sigmoid  (MXU; M padded to 8, only row 0 valid)
    logits = jnp.dot(w3t_ref[...], h2,
                     preferred_element_type=jnp.float32)       # [8, TILE_B]
    o_ref[...] = jax.nn.sigmoid(logits[0:1, :] + b3_ref[...]).astype(o_ref.dtype)


def pack_params(params):
    """One-time re-layout of math-layout params for the transposed MXU kernel."""
    w1, b1, w2, b2, w3, b3 = params
    w1 = jnp.asarray(w1, jnp.float32)          # [4, 64]
    w2 = jnp.asarray(w2, jnp.float32)          # [64, 64]
    w3 = jnp.asarray(w3, jnp.float32)          # [64, 1]
    h = w2.shape[0]
    w1t = jnp.zeros((h, _FEAT_PAD), jnp.float32).at[:, :w1.shape[0]].set(w1.T)
    w3t = jnp.zeros((_FEAT_PAD, h), jnp.float32).at[0, :].set(w3[:, 0])
    return (w1t,                                            # [64, 8]  W1^T (K-padded)
            jnp.asarray(b1, jnp.float32).reshape(-1, 1),    # [64, 1]
            w2.T,                                           # [64, 64] W2^T
            jnp.asarray(b2, jnp.float32).reshape(-1, 1),    # [64, 1]
            w3t,                                            # [8, 64]  W3^T (M-padded)
            jnp.asarray(b3, jnp.float32).reshape(1, 1))     # [1, 1]


def _choose_tiling(batch, max_tile):
    """Pick (tile, b_pad, n_steps): tile first, then pad batch to a multiple."""
    b_lane = _round_up(max(batch, 1), _LANE)
    tile_cap = min(max_tile, b_lane)
    # Keep >= 2 grid steps when there is enough work, so the "parallel" batch
    # axis actually feeds both TensorCores on v7x.
    if b_lane >= 2 * _LANE:
        tile_cap = min(tile_cap, _round_up(pl.cdiv(b_lane, 2), _LANE))
    n_steps = pl.cdiv(b_lane, tile_cap)
    tile = _round_up(pl.cdiv(b_lane, n_steps), _LANE)
    return tile, n_steps * tile, n_steps


def discriminator_forward(x, z, packed_params, *, max_tile=8192):
    """x: [B, 2], z: [B, 2]  ->  [B, 1]  (== sigmoid MLP on torch.cat([x, z], -1))."""
    w1t, b1, w2t, b2, w3t, b3 = packed_params
    B = x.shape[0]
    in_feat = x.shape[1] + z.shape[1]                         # 4
    tile, b_pad, n_steps = _choose_tiling(B, max_tile)

    # Fused input re-layout: one concat + transpose + pad chain producing a
    # single [8, b_pad] f32 array (batch on the lane axis, features padded
    # to the sublane count with zeros).
    xz_t = jnp.concatenate([x.astype(jnp.float32),
                            z.astype(jnp.float32)], axis=-1).T          # [4, B]
    xz_t = jnp.pad(xz_t, ((0, _FEAT_PAD - in_feat), (0, b_pad - B)))    # [8, b_pad]

    out = pl.pallas_call(
        _discriminator_kernel,
        out_shape=jax.ShapeDtypeStruct((1, b_pad), jnp.float32),
        grid=(n_steps,),
        in_specs=[
            pl.BlockSpec((_FEAT_PAD, tile), lambda i: (0, i)),   # [x;z]^T tile
            pl.BlockSpec(w1t.shape, lambda i: (0, 0)),           # W1^T (resident)
            pl.BlockSpec(b1.shape, lambda i: (0, 0)),            # b1
            pl.BlockSpec(w2t.shape, lambda i: (0, 0)),           # W2^T
            pl.BlockSpec(b2.shape, lambda i: (0, 0)),            # b2
            pl.BlockSpec(w3t.shape, lambda i: (0, 0)),           # W3^T
            pl.BlockSpec(b3.shape, lambda i: (0, 0)),            # b3
        ],
        out_specs=pl.BlockSpec((1, tile), lambda i: (0, i)),
        compiler_params=pltpu.CompilerParams(
            dimension_semantics=("parallel",),        # megacore split on v7x
            vmem_limit_bytes=32 * 1024 * 1024),       # headroom for v5e's 16 MiB default
    )(xz_t, w1t, b1, w2t, b2, w3t, b3)

    return out[0, :B].reshape(B, 1)


def init_params(key):
    """Deterministic init mimicking PyTorch Linear defaults (U[-1/sqrt(fan_in), +])."""
    def linear(key, fan_in, fan_out):
        kw, kb = jax.random.split(key)
        bound = 1.0 / jnp.sqrt(fan_in)
        w = jax.random.uniform(kw, (fan_in, fan_out), jnp.float32, -bound, bound)
        b = jax.random.uniform(kb, (fan_out,), jnp.float32, -bound, bound)
        return w, b

    k1, k2, k3 = jax.random.split(key, 3)
    w1, b1 = linear(k1, 4, 64)
    w2, b2 = linear(k2, 64, 64)
    w3, b3 = linear(k3, 64, 1)
    return (w1, b1, w2, b2, w3, b3)


def _reference(x, z, params):
    w1, b1, w2, b2, w3, b3 = params
    xz = jnp.concatenate([x, z], axis=-1)
    h1 = jax.nn.relu(xz @ w1 + b1)
    h2 = jax.nn.relu(h1 @ w2 + b2)
    return jax.nn.sigmoid(h2 @ w3 + b3)


if __name__ == "__main__":
    key = jax.random.PRNGKey(0)
    params = init_params(jax.random.fold_in(key, 17))
    packed = pack_params(params)          # one-time weight re-layout (amortized)

    # B=8: tiny batch, one 128-lane padded tile (single grid step).
    # B=2000: padded to 2048, two 1024-lane tiles -> exercises the batch grid,
    #         the megacore-friendly >=2-step heuristic, and the padding path.
    for B in (8, 2000):
        kx, kz = jax.random.split(jax.random.fold_in(key, B))
        x = jax.random.normal(kx, (B, 2), jnp.float32)    # x ∈ R^2
        z = jax.random.normal(kz, (B, 2), jnp.float32)    # z ∈ R^2 (cat -> 4 in-features)
        out = jax.block_until_ready(discriminator_forward(x, z, packed))
        ref = _reference(x, z, params)
        assert out.shape == (B, 1)
        assert jnp.allclose(out, ref, atol=1e-5, rtol=1e-5)

    print("KERNEL_OK")
</pallas_src>

<mosaic_0001>
module attributes {stable_mosaic.version = 11 : i64} {
  func.func @_discriminator_kernel(%arg0: i32, %arg1: memref<8x128xf32, #tpu.memory_space<vmem>>, %arg2: memref<64x8xf32, #tpu.memory_space<vmem>>, %arg3: memref<64x1xf32, #tpu.memory_space<vmem>>, %arg4: memref<64x64xf32, #tpu.memory_space<vmem>>, %arg5: memref<64x1xf32, #tpu.memory_space<vmem>>, %arg6: memref<8x64xf32, #tpu.memory_space<vmem>>, %arg7: memref<1x1xf32, #tpu.memory_space<vmem>>, %arg8: memref<1x128xf32, #tpu.memory_space<vmem>>) attributes {dimension_semantics = [#tpu.dimension_semantics<parallel>], iteration_bounds = array<i64: 1>, scalar_prefetch = 0 : i64, scratch_operands = 0 : i64, tpu.core_type = #tpu.core_type<tc>, window_params = [{transform_indices = @transform_0, window_bounds = array<i64: 8, 128>}, {pipeline_mode = #tpu.pipeline_mode<synchronous>, transform_indices = @transform_1, window_bounds = array<i64: 64, 8>}, {pipeline_mode = #tpu.pipeline_mode<synchronous>, transform_indices = @transform_2, window_bounds = array<i64: 64, 1>}, {pipeline_mode = #tpu.pipeline_mode<synchronous>, transform_indices = @transform_3, window_bounds = array<i64: 64, 64>}, {pipeline_mode = #tpu.pipeline_mode<synchronous>, transform_indices = @transform_4, window_bounds = array<i64: 64, 1>}, {pipeline_mode = #tpu.pipeline_mode<synchronous>, transform_indices = @transform_5, window_bounds = array<i64: 8, 64>}, {pipeline_mode = #tpu.pipeline_mode<synchronous>, transform_indices = @transform_6, window_bounds = array<i64: 1, 1>}, {transform_indices = @transform_7, window_bounds = array<i64: 1, 128>}]} {
    %c0 = arith.constant 0 : index
    %c0_0 = arith.constant 0 : index
    %0 = vector.load %arg2[%c0, %c0_0] : memref<64x8xf32, #tpu.memory_space<vmem>>, vector<64x8xf32>
    %c0_1 = arith.constant 0 : index
    %c0_2 = arith.constant 0 : index
    %1 = vector.load %arg1[%c0_1, %c0_2] : memref<8x128xf32, #tpu.memory_space<vmem>>, vector<8x128xf32>
    %cst = arith.constant dense<0.000000e+00> : vector<64x128xf32>
    %2 = tpu.matmul %0, %1, %cst {dimension_numbers = #tpu.dot_dimension_numbers<[1], [0], [0], [1], [0, 0, 1, 1], [], []>} : vector<64x8xf32>, vector<8x128xf32>, vector<64x128xf32> -> vector<64x128xf32>
    %c0_3 = arith.constant 0 : index
    %c0_4 = arith.constant 0 : index
    %3 = vector.load %arg3[%c0_3, %c0_4] : memref<64x1xf32, #tpu.memory_space<vmem>>, vector<64x1xf32>
    %4 = vector.broadcast %3 : vector<64x1xf32> to vector<64x128xf32>
    %5 = arith.addf %2, %4 : vector<64x128xf32>
    %cst_5 = arith.constant 0.000000e+00 : f32
    %6 = vector.broadcast %cst_5 : f32 to vector<64x128xf32>
    %7 = arith.maximumf %5, %6 : vector<64x128xf32>
    %c0_6 = arith.constant 0 : index
    %c0_7 = arith.constant 0 : index
    %8 = vector.load %arg4[%c0_6, %c0_7] : memref<64x64xf32, #tpu.memory_space<vmem>>, vector<64x64xf32>
    %cst_8 = arith.constant dense<0.000000e+00> : vector<64x128xf32>
    %9 = tpu.matmul %8, %7, %cst_8 {dimension_numbers = #tpu.dot_dimension_numbers<[1], [0], [0], [1], [0, 0, 1, 1], [], []>} : vector<64x64xf32>, vector<64x128xf32>, vector<64x128xf32> -> vector<64x128xf32>
    %c0_9 = arith.constant 0 : index
    %c0_10 = arith.constant 0 : index
    %10 = vector.load %arg5[%c0_9, %c0_10] : memref<64x1xf32, #tpu.memory_space<vmem>>, vector<64x1xf32>
    %11 = vector.broadcast %10 : vector<64x1xf32> to vector<64x128xf32>
    %12 = arith.addf %9, %11 : vector<64x128xf32>
    %cst_11 = arith.constant 0.000000e+00 : f32
    %13 = vector.broadcast %cst_11 : f32 to vector<64x128xf32>
    %14 = arith.maximumf %12, %13 : vector<64x128xf32>
    %c0_12 = arith.constant 0 : index
    %c0_13 = arith.constant 0 : index
    %15 = vector.load %arg6[%c0_12, %c0_13] : memref<8x64xf32, #tpu.memory_space<vmem>>, vector<8x64xf32>
    %cst_14 = arith.constant dense<0.000000e+00> : vector<8x128xf32>
    %16 = tpu.matmul %15, %14, %cst_14 {dimension_numbers = #tpu.dot_dimension_numbers<[1], [0], [0], [1], [0, 0, 1, 1], [], []>} : vector<8x64xf32>, vector<64x128xf32>, vector<8x128xf32> -> vector<8x128xf32>
    %17 = vector.extract_strided_slice %16 {offsets = [0, 0], sizes = [1, 128], strides = [1, 1]} : vector<8x128xf32> to vector<1x128xf32>
    %c0_15 = arith.constant 0 : index
    %c0_16 = arith.constant 0 : index
    %18 = vector.load %arg7[%c0_15, %c0_16] : memref<1x1xf32, #tpu.memory_space<vmem>>, vector<1x1xf32>
    %19 = vector.broadcast %18 : vector<1x1xf32> to vector<1x128xf32>
    %20 = arith.addf %17, %19 : vector<1x128xf32>
    %21 = arith.negf %20 : vector<1x128xf32>
    %22 = math.exp %21 : vector<1x128xf32>
    %cst_17 = arith.constant 1.000000e+00 : f32
    %23 = vector.broadcast %cst_17 : f32 to vector<1x128xf32>
    %24 = arith.addf %23, %22 : vector<1x128xf32>
    %25 = arith.divf %23, %24 : vector<1x128xf32>
    %c0_18 = arith.constant 0 : index
    %c0_19 = arith.constant 0 : index
    %26 = vector.load %arg8[%c0_18, %c0_19] : memref<1x128xf32, #tpu.memory_space<vmem>>, vector<1x128xf32>
    tpu.vector_store %arg8[%c0_18, %c0_19], %25 {strides = array<i32>} : memref<1x128xf32, #tpu.memory_space<vmem>>, vector<1x128xf32>,
    return
  }
  func.func @transform_0(%arg0: i32) -> (i32, i32) {
    %c0_i32 = arith.constant 0 : i32
    %c0_i32_0 = arith.constant 0 : i32
    return %c0_i32, %arg0 : i32, i32
  }
  func.func @transform_1(%arg0: i32) -> (i32, i32) {
    %c0_i32 = arith.constant 0 : i32
    %c0_i32_0 = arith.constant 0 : i32
    %c0_i32_1 = arith.constant 0 : i32
    return %c0_i32, %c0_i32_0 : i32, i32
  }
  func.func @transform_2(%arg0: i32) -> (i32, i32) {
    %c0_i32 = arith.constant 0 : i32
    %c0_i32_0 = arith.constant 0 : i32
    %c0_i32_1 = arith.constant 0 : i32
    return %c0_i32, %c0_i32_0 : i32, i32
  }
  func.func @transform_3(%arg0: i32) -> (i32, i32) {
    %c0_i32 = arith.constant 0 : i32
    %c0_i32_0 = arith.constant 0 : i32
    %c0_i32_1 = arith.constant 0 : i32
    return %c0_i32, %c0_i32_0 : i32, i32
  }
  func.func @transform_4(%arg0: i32) -> (i32, i32) {
    %c0_i32 = arith.constant 0 : i32
    %c0_i32_0 = arith.constant 0 : i32
    %c0_i32_1 = arith.constant 0 : i32
    return %c0_i32, %c0_i32_0 : i32, i32
  }
  func.func @transform_5(%arg0: i32) -> (i32, i32) {
    %c0_i32 = arith.constant 0 : i32
    %c0_i32_0 = arith.constant 0 : i32
    %c0_i32_1 = arith.constant 0 : i32
    return %c0_i32, %c0_i32_0 : i32, i32
  }
  func.func @transform_6(%arg0: i32) -> (i32, i32) {
    %c0_i32 = arith.constant 0 : i32
    %c0_i32_0 = arith.constant 0 : i32
    %c0_i32_1 = arith.constant 0 : i32
    return %c0_i32, %c0_i32_0 : i32, i32
  }
  func.func @transform_7(%arg0: i32) -> (i32, i32) {
    %c0_i32 = arith.constant 0 : i32
    %c0_i32_0 = arith.constant 0 : i32
    return %c0_i32, %arg0 : i32, i32
  }
}

</mosaic_0001>

<bundles_post_ra>
// kernel: tpu_custom_call.1
= control target key start
LH: loop header
LB: loop body
LE: loop exit
PB: predicated region body
PF: predicated region fallthrough
CT: control target
= control target key end

     0   :  { %s879_s0 = inlined_call_operand.vmem [shape: f32[8,128], index: 0, kind: input, shape index: {}]   ;;  %s880_s1 = inlined_call_operand.vmem [shape: f32[64,8], index: 1, kind: input, shape index: {}]   ;;  %s881_s2 = inlined_call_operand.vmem [shape: f32[64,1], index: 2, kind: input, shape index: {}]   ;;  %s882_s3 = inlined_call_operand.vmem [shape: f32[64,64], index: 3, kind: input, shape index: {}]   ;;  %s883_s4 = inlined_call_operand.vmem [shape: f32[64,1], index: 4, kind: input, shape index: {}]   ;;  %s884_s5 = inlined_call_operand.vmem [shape: f32[8,64], index: 5, kind: input, shape index: {}]   ;;  %s885_s6 = inlined_call_operand.<no memory space> [shape: f32[1,1], index: 6, kind: input, shape index: {}]   ;;  %s886_s7 = inlined_call_operand.hbm [shape: f32[1,128], index: 7, kind: output, shape index: {}]  }
   0x1   :  { %v12_v0 = vstv %s885_s6 }
   0x2   :  { %13 = vst [vmem:[#allocation2] sm:$0x1] %v12_v0 }
   0x3   :  { %v37_v1 = vld [vmem:[%s879_s0] sm:$0xff]  ;;  %vm86_vm0 = vcmask 64512   ;;  %v30_v3 = vld [vmem:[%s880_s1 + $0x8] sm:$0xff]  ;;  %v31_v4 = vld [vmem:[%s880_s1 + $0x10] sm:$0xff]  ;;  %v700_v5 = vmov 0  }
   0x4   :  { %v29_v2 = vld [vmem:[%s880_s1] sm:$0xff]  ;;  %576 = vmatprep.subr.mxu0 %v37_v1  ;;  %670 = vset.pattern.permute.xlu0 %v700_v5  ;;  %v40_v7 = vld [vmem:[%s881_s2 + $0x10] sm:$0xff]  ;;  %v32_v8 = vld [vmem:[%s880_s1 + $0x18] sm:$0xff] }
   0x5   :  { %578 = vmatprep.mubr.msk.f32.mxu0 %vm86_vm0, %v29_v2  ;;  %577 = vmatpush3.msra.mxu0 %v37_v1  ;;  %v38_v6 = vld [vmem:[%s881_s2] sm:$0xff]  ;;  %v39_v10 = vld [vmem:[%s881_s2 + $0x8] sm:$0xff]  ;;  %v41_v11 = vld [vmem:[%s881_s2 + $0x18] sm:$0xff] }
   0x6   :  { %579 = vmatmul.mubr.msk.f32.vlgmr.msra.gmra.mrb[0].mxu0 %vm86_vm0, %v30_v3  ;;  %671 = vset.pattern.permute.xlu1 %v700_v5  ;;  %v33_v9 = vld [vmem:[%s880_s1 + $0x20] sm:$0xff]  ;;  %v34_v12 = vld [vmem:[%s880_s1 + $0x28] sm:$0xff] }
   0x7   :  { %581 = vmatprep.mubr.msk.f32.mxu0 %vm86_vm0, %v31_v4  ;;  %48 = vperm.xlu0 %670, %v38_v6  }
   0x8   :  { %58 = vperm.xlu1 %671, %v40_v7  }
   0xa   :  { %582 = vmatmul.mubr.msk.f32.gmra.mrb[2].mxu0 %vm86_vm0, %v32_v8 }
   0xb   :  { %584 = vmatprep.mubr.msk.f32.mxu0 %vm86_vm0, %v33_v9  ;;  %53 = vperm.xlu0 %670, %v39_v10  }
   0xc   :  { %14 = vsyncpa [#allocation4], 0  ;;  %v35_v13 = vld [vmem:[%s880_s1 + $0x30] sm:$0xff]  ;;  %v42_v14 = vld [vmem:[%s881_s2 + $0x20] sm:$0xff]  ;;  %63 = vperm.xlu1 %671, %v41_v11   ;;  %vm280_vm1 = vcmask 523264   ;;  %v701_v8 = vmov 0.0|0.0  }
   0xd   :  { %v43_v15 = vld [vmem:[%s881_s2 + $0x28] sm:$0xff]  ;;  %v36_v16 = vld [vmem:[%s880_s1 + $0x38] sm:$0xff]  ;;  %v44_v17 = vld [vmem:[%s881_s2 + $0x30] sm:$0xff]  ;;  %653 = vmatprep.subr.bf16.mxu0 %v701_v8  ;;  %vm702_vm2 = vmmov 0   ;;  %v703_v9 = vmov 0.0   ;;  %s704_s14 = smov [#allocation3]  }
   0xe   :  { %585 = vmatmul.mubr.msk.f32.gmra.mrb[4].mxu0 %vm86_vm0, %v34_v12  ;;  %v45_v18 = vld [vmem:[%s881_s2 + $0x38] sm:$0xff]  ;;  %v232_v19 = vld [vmem:[%s883_s4] sm:$0xff]  ;;  %v233_v20 = vld [vmem:[%s883_s4 + $0x8] sm:$0xff]  ;;  %s516_s15 = sshll.u32 %s704_s14, 4  ;;  %s517_s15 = int_to_ptr.vmem [resolvable:$true] %s516_s15 }
   0xf   :  { %587 = vmatprep.mubr.msk.f32.mxu0 %vm86_vm0, %v35_v13  ;;  %68 = vperm.xlu0 %670, %v42_v14   ;;  %v234_v21 = vld [vmem:[%s883_s4 + $0x10] sm:$0xff]  ;;  %v235_v22 = vld [vmem:[%s883_s4 + $0x18] sm:$0xff]  ;;  %v236_v23 = vld [vmem:[%s883_s4 + $0x20] sm:$0xff]  ;;  %s680_s2 = scalar_lea.vmem %s517_s15, 32  ;;  %p681_p1 = scmp.lt.s32.totalorder %s517_s15, %s517_s15 }
  0x10   :  { %73 = vperm.xlu1 %671, %v43_v15   ;;  %v237_v24 = vld [vmem:[%s883_s4 + $0x28] sm:$0xff]  ;;  %v238_v25 = vld [vmem:[%s883_s4 + $0x30] sm:$0xff]  ;;  %v239_v26 = vld [vmem:[%s883_s4 + $0x38] sm:$0xff] }
  0x11   :  { %v492_v27 = vld [vmem:[#allocation2] sm:$0x1]  ;;  %v225_v1 = vld [vmem:[%s882_s3 + $0x8] sm:$0xff]  ;;  %v226_v2 = vld [vmem:[%s882_s3 + $0x10] sm:$0xff] }
  0x12   :  { %588 = vmatmul.mubr.msk.f32.gmra.mrb[6].mxu0 %vm86_vm0, %v36_v16  ;;  %v224_v28 = vld [vmem:[%s882_s3] sm:$0xff]  ;;  %v227_v3 = vld [vmem:[%s882_s3 + $0x18] sm:$0xff]  ;;  %v229_v5 = vld [vmem:[%s882_s3 + $0x28] sm:$0xff] }
  0x13   :  { %78 = vperm.xlu0 %670, %v44_v17   ;;  %606 = vmatprep.mubr.msk.f32.mxu1 %vm280_vm1, %v224_v28  ;;  %v228_v4 = vld [vmem:[%s882_s3 + $0x20] sm:$0xff]  ;;  %v230_v6 = vld [vmem:[%s882_s3 + $0x30] sm:$0xff]  ;;  %v231_v7 = vld [vmem:[%s882_s3 + $0x38] sm:$0xff] }
  0x14   :  { %83 = vperm.xlu1 %671, %v45_v18   ;;  %634 = vmatprep.mubr.msk.f32.mxu0 %vm702_vm2, %v703_v9 }
  0x17   :  { %242 = vperm.xlu0 %670, %v232_v19  }
  0x18   :  { %247 = vperm.xlu1 %671, %v233_v20  }
  0x1b   :  { %252 = vperm.xlu0 %670, %v234_v21  }
  0x1c   :  { %257 = vperm.xlu1 %671, %v235_v22  }
  0x1f   :  { %262 = vperm.xlu0 %670, %v236_v23  }
  0x20   :  { %267 = vperm.xlu1 %671, %v237_v24  }
  0x23   :  { %272 = vperm.xlu0 %670, %v238_v25  }
  0x24   :  { %277 = vperm.xlu1 %671, %v239_v26  }
  0x27   :  { %495 = vperm.xlu0 %670, %v492_v27  }
  0x86   :  { %v49_v29 = vpop.permute.xlu0 %48 }
  0x87   :  { %v59_v30 = vpop.permute.xlu1 %58 }
  0x8a   :  { %v54_v31 = vpop.permute.xlu0 %53 }
  0x8b   :  { %v64_v32 = vpop.permute.xlu1 %63 }
  0x8e   :  { %v69_v45 = vpop.permute.xlu0 %68 }
  0x8f   :  { %v74_v42 = vpop.permute.xlu1 %73 }
  0x92   :  { %v79_v57 = vpop.permute.xlu0 %78 }
  0x93   :  { %v84_v54 = vpop.permute.xlu1 %83 }
  0x96   :  { %v243_v11 = vpop.permute.xlu0 %242 }
  0x97   :  { %v248_v10 = vpop.permute.xlu1 %247 }
  0x9a   :  { %v253_v14 = vpop.permute.xlu0 %252 }
  0x9b   :  { %v258_v12 = vpop.permute.xlu1 %257 }
  0x9e   :  { %v263_v26 = vpop.permute.xlu0 %262 }
  0x9f   :  { %v268_v23 = vpop.permute.xlu1 %267 }
  0xd9   :  { %v580_v33 = vpop.f32.mrb[0].mxu0 }
  0xda   :  { %v183_v34 = vadd.f32 %v580_v33, %v54_v31  ;;  %v177_v35 = vpop.f32.mrb[1].mxu0 }
  0xdb   :  { %v178_v36 = vadd.f32 %v177_v35, %v49_v29  ;;  %v278_v35 = vpop.permute.xlu1 %277 }
  0xdc   :  { %v217_v37 = vmax.f32 %v183_v34, 0.0 }
  0xdd   :  { %v216_v38 = vmax.f32 %v178_v36, 0.0  ;;  %v583_v39 = vpop.f32.mrb[2].mxu0 }
  0xde   :  { %v193_v40 = vadd.f32 %v583_v39, %v64_v32  ;;  %v187_v41 = vpop.f32.mrb[3].mxu0 }
  0xdf   :  { %v188_v43 = vadd.f32 %v187_v41, %v59_v30  ;;  %v637_v44 = vpack.c.bf16 %v217_v37, %v216_v38  ;;  %v273_v38 = vpop.permute.xlu0 %272 }
  0xe0   :  { %v219_v46 = vmax.f32 %v193_v40, 0.0 }
  0xe1   :  { %v218_v47 = vmax.f32 %v188_v43, 0.0  ;;  %v586_v48 = vpop.f32.mrb[4].mxu0  ;;  %638 = vmatprep.subr.bf16.mxu1 %v637_v44 }
  0xe2   :  { %v203_v49 = vadd.f32 %v586_v48, %v74_v42  ;;  %v197_v50 = vpop.f32.mrb[5].mxu0  ;;  %640 = vmatpush3.bf16.msra.mxu1 %v637_v44 }
  0xe3   :  { %v641_v51 = vpack.c.bf16 %v219_v46, %v218_v47  ;;  %v198_v52 = vadd.f32 %v197_v50, %v69_v45  ;;  %v418_v46 = vld [vmem:[%s884_s5] sm:$0xff]  ;;  %v498_v47 = vlaneseq  ;;  %v496_v50 = vpop.permute.xlu0 %495  ;;  %s676_s5 = scalar_lea.vmem %s517_s15, 16 }
  0xe4   :  { %v221_v53 = vmax.f32 %v203_v49, 0.0  ;;  %p677_p0 = scmp.ne.s32.totalorder %s517_s15, %s676_s5  ;;  %p682_p2 = scmp.lt.s32.totalorder %s680_s2, %s676_s5 }
  0xe5   :  { %v220_v55 = vmax.f32 %v198_v52, 0.0  ;;  %v589_v56 = vpop.f32.mrb[6].mxu0  ;;  %642 = vmatprep.subr.bf16.mxu1 %v641_v51  ;;  %v499_v48 = vshrl.u32 %v498_v47, 7 }
  0xe6   :  { %v213_v58 = vadd.f32 %v589_v56, %v84_v54  ;;  %v207_v59 = vpop.f32.mrb[7].mxu0  ;;  %644 = vmatpush3.bf16.msra.mxu1 %v641_v51  ;;  %p683_p3 = por %p682_p2, %p681_p1 }
  0xe7   :  { %v645_v60 = vpack.c.bf16 %v221_v53, %v220_v55  ;;  %v208_v61 = vadd.f32 %v207_v59, %v79_v57  ;;  %v500_v49 = vsub.s32 0, %v499_v48 }
  0xe8   :  { %v223_v62 = vmax.f32 %v213_v58, 0.0  ;;  %p684_p4 = pnand %p683_p3, %p677_p0 }
  0xe9   :  { %v222_v63 = vmax.f32 %v208_v61, 0.0  ;;  %646 = vmatprep.subr.bf16.mxu1 %v645_v60  ;;  %v501_v51 = vrot.slane %v496_v50, %v500_v49 }
  0xea   :  { %648 = vmatpush3.bf16.msra.mxu1 %v645_v60 }
  0xeb   :  { %v649_v0 = vpack.c.bf16 %v223_v62, %v222_v63 }
  0xed   :  { %650 = vmatprep.subr.bf16.mxu1 %v649_v0 }
  0xee   :  { %652 = vmatpush3.bf16.msra.mxu1 %v649_v0 }
  0xf1   :  { %607 = vmatmul.mubr.msk.f32.vlgmr.msra.gmra.mrb[0].mxu1 %vm280_vm1, %v225_v1 }
  0xf2   :  { %609 = vmatprep.mubr.msk.f32.mxu1 %vm280_vm1, %v226_v2 }
  0xf5   :  { %610 = vmatmul.mubr.msk.f32.gmra.mrb[2].mxu1 %vm280_vm1, %v227_v3 }
  0xf6   :  { %612 = vmatprep.mubr.msk.f32.mxu1 %vm280_vm1, %v228_v4 }
  0xf9   :  { %613 = vmatmul.mubr.msk.f32.gmra.mrb[4].mxu1 %vm280_vm1, %v229_v5 }
  0xfa   :  { %615 = vmatprep.mubr.msk.f32.mxu1 %vm280_vm1, %v230_v6 }
  0xfd   :  { %616 = vmatmul.mubr.msk.f32.gmra.mrb[6].mxu1 %vm280_vm1, %v231_v7 }
 0x1c4   :  { %v608_v13 = vpop.f32.mrb[0].mxu1 }
 0x1c5   :  { %v377_v15 = vadd.f32 %v608_v13, %v248_v10  ;;  %v371_v16 = vpop.f32.mrb[1].mxu1 }
 0x1c6   :  { %v372_v17 = vadd.f32 %v371_v16, %v243_v11 }
 0x1c7   :  { %v411_v18 = vmax.f32 %v377_v15, 0.0 }
 0x1c8   :  { %v410_v19 = vmax.f32 %v372_v17, 0.0  ;;  %v611_v20 = vpop.f32.mrb[2].mxu1 }
 0x1c9   :  { %v387_v21 = vadd.f32 %v611_v20, %v258_v12  ;;  %v381_v22 = vpop.f32.mrb[3].mxu1 }
 0x1ca   :  { %v654_v24 = vpack.c.bf16 %v411_v18, %v410_v19  ;;  %v382_v25 = vadd.f32 %v381_v22, %v253_v14 }
 0x1cb   :  { %v413_v27 = vmax.f32 %v387_v21, 0.0 }
 0x1cc   :  { %v412_v28 = vmax.f32 %v382_v25, 0.0  ;;  %v614_v29 = vpop.f32.mrb[4].mxu1  ;;  %655 = vmatpush3.bf16.msra.mxu0 %v654_v24 }
 0x1cd   :  { %v397_v30 = vadd.f32 %v614_v29, %v268_v23  ;;  %v391_v31 = vpop.f32.mrb[5].mxu1  ;;  %656 = vmatprep.subr.bf16.mxu0 %v701_v8 }
 0x1ce   :  { %v657_v32 = vpack.c.bf16 %v413_v27, %v412_v28  ;;  %v392_v33 = vadd.f32 %v391_v31, %v263_v26 }
 0x1cf   :  { %v415_v34 = vmax.f32 %v397_v30, 0.0 }
 0x1d0   :  { %v414_v36 = vmax.f32 %v392_v33, 0.0  ;;  %v617_v37 = vpop.f32.mrb[6].mxu1  ;;  %658 = vmatpush3.bf16.msra.mxu0 %v657_v32 }
 0x1d1   :  { %v407_v39 = vadd.f32 %v617_v37, %v278_v35  ;;  %v401_v40 = vpop.f32.mrb[7].mxu1  ;;  %659 = vmatprep.subr.bf16.mxu0 %v701_v8 }
 0x1d2   :  { %v660_v41 = vpack.c.bf16 %v415_v34, %v414_v36  ;;  %v402_v42 = vadd.f32 %v401_v40, %v273_v38 }
 0x1d3   :  { %v417_v43 = vmax.f32 %v407_v39, 0.0 }
 0x1d4   :  { %v416_v44 = vmax.f32 %v402_v42, 0.0  ;;  %661 = vmatpush3.bf16.msra.mxu0 %v660_v41 }
 0x1d5   :  { %662 = vmatprep.subr.bf16.mxu0 %v701_v8 }
 0x1d6   :  { %v663_v45 = vpack.c.bf16 %v417_v43, %v416_v44 }
 0x1d8   :  { %664 = vmatpush3.bf16.msra.mxu0 %v663_v45 }
 0x1db   :  { %635 = vmatmul.mubr.msk.f32.vlgmr.msra.gmra.mrb[8].mxu0 %vm280_vm1, %v418_v46 }
 0x2ae   :  { %v488_v52 = vpop.f32.mrb[8].mxu0 }
 0x2af   :  { %v502_v53 = vadd.f32 %v501_v51, %v488_v52  ;;  %v636_v54 = vpop.f32.mrb[9].mxu0 }
 0x2b1   :  { %v541_v55 = vmul.f32 -1.442695, %v502_v53 }
 0x2b3   :  { %672 = vpow2.f32 %v541_v55 }
 0x2bd   :  { %v673_v56 = vpop.eup %672 }
 0x2be   :  { %v506_v57 = vadd.f32 1.0, %v673_v56 }
 0x2c0   :  { %674 = vrcp.f32 %v506_v57 }
 0x2ca   :  { %v675_v58 = vpop.eup %674 }
 0x2cb   :  { %509 = vst [vmem:[#allocation3] sm:$0x1] %v675_v58 }
 0x2cc   :  { %687 = shalt.err (!%p684_p4)
}
 0x2cd   :  { %s688_s18 = scalar_lea.hbm %s886_s7, 16 }
 0x2ce   :  { %p689_p5 = scmp.ne.s32.totalorder %s886_s7, %s688_s18  ;;  %p692_p6 = scmp.lt.u32.totalorder %s688_s18, %s886_s7 }
 0x2d0   :  { %p694_p7 = pnand %p692_p6, %p689_p5 }
 0x2d2   :  { %697 = shalt.err (!%p694_p7)
}
 0x2d3   :  { %519 = dma.vmem_to_hbm [thread:$0]  %s517_s15, 16, %s886_s7, [#allocation4]  }
 0x2d4   :  { %698 = dma.done.wait [#allocation4], 16  }
 0x2d5   :  { %699 = vsyncadd [#allocation4], 4294967280 }
 0x2d6   :  { %523 = vsyncpa [#allocation4], 1 }

</bundles_post_ra>
